<compile_context>
chip_gen: v7x
topology: tpu7x:2x2x1
jax: 0.10.0
libtpu: 0.0.40
codegen_flags: <defaults>
</compile_context>

<pallas_src>
import jax
import jax.numpy as jnp
from jax import lax
from jax.experimental import pallas as pl
from jax.experimental.pallas import tpu as pltpu


def _conv_matmul_kernel(p_ref, w_ref, b_ref, o_ref):
    # (C_out, K) @ (K, tile_p) on the MXU, f32 accumulation, bias broadcast-add.
    # Output tile (C_out, tile_p): flattened output spatial sits on lanes, so
    # stores are unmasked / lane-dense.
    acc = jnp.dot(w_ref[...], p_ref[...], preferred_element_type=jnp.float32)
    o_ref[...] = (acc + b_ref[...]).astype(o_ref.dtype)


def conv_downsample(x_nchw, weight, bias, down_factor=2, tile_p=None,
                    compute_dtype=None):
    """Equivalent of ConvDownSample.forward (NCHW in / NCHW out).

    compute_dtype: dtype for the patches / weights fed to the MXU
      (e.g. jnp.bfloat16 halves HBM/DMA bytes); accumulation is always f32.
      None keeps the input dtype (exact module semantics).
    """
    pad = down_factor // 2          # same formulas as the PyTorch module
    k = 2 * pad + 1
    s = down_factor
    N, C, H, W = x_nchw.shape
    C_out = weight.shape[0]
    Ho = (H + 2 * pad - k) // s + 1
    Wo = (W + 2 * pad - k) // s + 1
    P = Ho * Wo
    K = k * k * C

    if compute_dtype is None:
        compute_dtype = x_nchw.dtype
    out_dtype = x_nchw.dtype

    # ---- glue: transposed im2col, (N, K, P) with flattened spatial LAST ----
    xp = jnp.pad(x_nchw, ((0, 0), (0, 0), (pad, pad), (pad, pad)))
    xp = xp.astype(compute_dtype)
    taps = []
    for kh in range(k):
        for kw in range(k):
            taps.append(xp[:, :, kh:kh + s * Ho:s, kw:kw + s * Wo:s])
    # (N, k*k, C, Ho, Wo) -> (N, K, P); K ordering = (kh, kw, ci).
    patches_t = jnp.stack(taps, axis=1).reshape(N, K, P)

    # PyTorch weight (C_out, C_in, kh, kw) -> (C_out, kh, kw, ci) -> (C_out, K)
    w_mat = jnp.transpose(weight, (0, 2, 3, 1)).reshape(C_out, K)
    w_mat = w_mat.astype(compute_dtype)
    b_mat = bias.reshape(C_out, 1).astype(jnp.float32)

    # ---- spatial tiling: lane-dense, as large as VMEM comfortably allows ----
    LANE = 128
    if tile_p is None:
        tile_p = 2048          # double-buffered blocks stay well under VMEM limits
    if P <= tile_p:
        tile_p = P             # whole output plane of one image in a single tile
    else:
        tile_p = max(LANE, (tile_p // LANE) * LANE)
    grid_p = pl.cdiv(P, tile_p)
    P_pad = grid_p * tile_p
    if P_pad != P:
        # Ragged last tile: zero-pad the single patches materialization; the
        # extra output columns are sliced off below.
        patches_t = jnp.pad(patches_t, ((0, 0), (0, 0), (0, P_pad - P)))

    out = pl.pallas_call(
        _conv_matmul_kernel,
        out_shape=jax.ShapeDtypeStruct((N, C_out, P_pad), out_dtype),
        grid_spec=pltpu.PrefetchScalarGridSpec(
            num_scalar_prefetch=0,
            grid=(N, grid_p),
            in_specs=[
                pl.BlockSpec((None, K, tile_p), lambda n, j: (n, 0, j)),  # patches
                pl.BlockSpec((C_out, K), lambda n, j: (0, 0)),            # weight (resident)
                pl.BlockSpec((C_out, 1), lambda n, j: (0, 0)),            # bias
            ],
            out_specs=pl.BlockSpec((None, C_out, tile_p), lambda n, j: (n, 0, j)),
        ),
        compiler_params=pltpu.CompilerParams(
            dimension_semantics=("parallel", "parallel")),
    )(patches_t, w_mat, b_mat)

    # Output is already in NCHW order: drop spatial padding and unflatten.
    return out[:, :, :P].reshape(N, C_out, Ho, Wo)


if __name__ == "__main__":
    # Small shapes consistent with the module: batch=2, channels=4, spatial=16.
    N, C, H, W = 2, 4, 16, 16
    down_factor = 2
    pad = down_factor // 2
    k = 2 * pad + 1

    key = jax.random.PRNGKey(0)
    kx, kw_, kb = jax.random.split(key, 3)

    x = jax.random.normal(kx, (N, C, H, W), dtype=jnp.float32)

    # Deterministic parameter init matching nn.Conv2d + kaiming_normal_:
    #   weight ~ N(0, sqrt(2 / fan_in)), fan_in = C_in * k * k
    #   bias   ~ U(-1/sqrt(fan_in), 1/sqrt(fan_in))   (Conv2d default, not re-init)
    fan_in = C * k * k
    w_std = (2.0 / fan_in) ** 0.5
    weight = w_std * jax.random.normal(kw_, (C, C, k, k), dtype=jnp.float32)
    b_bound = 1.0 / (fan_in ** 0.5)
    bias = jax.random.uniform(kb, (C,), minval=-b_bound, maxval=b_bound,
                              dtype=jnp.float32)

    def ref_conv(xf, wf):
        return lax.conv_general_dilated(
            xf, wf, window_strides=(down_factor, down_factor),
            padding=((pad, pad), (pad, pad)),
            dimension_numbers=("NCHW", "OIHW", "NCHW"),
        ) + bias[None, :, None, None]

    # f32 path: exact module semantics, checked against XLA's native conv.
    out = conv_downsample(x, weight, bias, down_factor=down_factor)
    out = jax.block_until_ready(out)
    ref = ref_conv(x, weight)
    assert out.shape == (N, C, H // down_factor, W // down_factor), out.shape
    assert jnp.allclose(out, ref, atol=1e-4, rtol=1e-4), "mismatch vs reference conv (f32)"

    # bf16 compute path (half the HBM/DMA bytes, f32 accumulation); compared
    # against the same conv computed from bf16-rounded operands.
    out_bf = conv_downsample(x, weight, bias, down_factor=down_factor,
                             compute_dtype=jnp.bfloat16)
    out_bf = jax.block_until_ready(out_bf)
    ref_bf = ref_conv(x.astype(jnp.bfloat16).astype(jnp.float32),
                      weight.astype(jnp.bfloat16).astype(jnp.float32))
    assert jnp.allclose(out_bf, ref_bf, atol=1e-2, rtol=1e-2), "mismatch vs reference conv (bf16)"

    print("KERNEL_OK")
</pallas_src>

<mosaic_0001>
module attributes {stable_mosaic.version = 11 : i64} {
  func.func @_conv_matmul_kernel(%arg0: i32, %arg1: i32, %arg2: memref<1x36x64xf32, #tpu.memory_space<vmem>>, %arg3: memref<4x36xf32, #tpu.memory_space<vmem>>, %arg4: memref<4x1xf32, #tpu.memory_space<vmem>>, %arg5: memref<1x4x64xf32, #tpu.memory_space<vmem>>) attributes {dimension_semantics = [#tpu.dimension_semantics<parallel>, #tpu.dimension_semantics<parallel>], iteration_bounds = array<i64: 2, 1>, scalar_prefetch = 0 : i64, scratch_operands = 0 : i64, tpu.core_type = #tpu.core_type<tc>, window_params = [{transform_indices = @transform_0, window_bounds = array<i64: 1, 36, 64>}, {pipeline_mode = #tpu.pipeline_mode<synchronous>, transform_indices = @transform_1, window_bounds = array<i64: 4, 36>}, {pipeline_mode = #tpu.pipeline_mode<synchronous>, transform_indices = @transform_2, window_bounds = array<i64: 4, 1>}, {transform_indices = @transform_3, window_bounds = array<i64: 1, 4, 64>}]} {
    %c0 = arith.constant 0 : index
    %c0_0 = arith.constant 0 : index
    %0 = vector.load %arg3[%c0, %c0_0] : memref<4x36xf32, #tpu.memory_space<vmem>>, vector<4x36xf32>
    %c0_1 = arith.constant 0 : index
    %c0_2 = arith.constant 0 : index
    %c0_3 = arith.constant 0 : index
    %1 = vector.load %arg2[%c0_1, %c0_2, %c0_3] : memref<1x36x64xf32, #tpu.memory_space<vmem>>, vector<1x36x64xf32>
    %2 = vector.shape_cast %1 : vector<1x36x64xf32> to vector<36x64xf32>
    %cst = arith.constant dense<0.000000e+00> : vector<4x64xf32>
    %3 = tpu.matmul %0, %2, %cst {dimension_numbers = #tpu.dot_dimension_numbers<[1], [0], [0], [1], [0, 0, 1, 1], [], []>} : vector<4x36xf32>, vector<36x64xf32>, vector<4x64xf32> -> vector<4x64xf32>
    %c0_4 = arith.constant 0 : index
    %c0_5 = arith.constant 0 : index
    %4 = vector.load %arg4[%c0_4, %c0_5] : memref<4x1xf32, #tpu.memory_space<vmem>>, vector<4x1xf32>
    %5 = vector.broadcast %4 : vector<4x1xf32> to vector<4x64xf32>
    %6 = arith.addf %3, %5 : vector<4x64xf32>
    %c0_6 = arith.constant 0 : index
    %c0_7 = arith.constant 0 : index
    %c0_8 = arith.constant 0 : index
    %7 = vector.load %arg5[%c0_6, %c0_7, %c0_8] : memref<1x4x64xf32, #tpu.memory_space<vmem>>, vector<1x4x64xf32>
    %8 = vector.shape_cast %7 : vector<1x4x64xf32> to vector<4x64xf32>
    %9 = vector.shape_cast %6 : vector<4x64xf32> to vector<1x4x64xf32>
    tpu.vector_store %arg5[%c0_6, %c0_7, %c0_8], %9 {strides = array<i32>} : memref<1x4x64xf32, #tpu.memory_space<vmem>>, vector<1x4x64xf32>,
    return
  }
  func.func @transform_0(%arg0: i32, %arg1: i32) -> (i32, i32, i32) {
    %c0_i32 = arith.constant 0 : i32
    %c0_i32_0 = arith.constant 0 : i32
    return %arg0, %c0_i32, %arg1 : i32, i32, i32
  }
  func.func @transform_1(%arg0: i32, %arg1: i32) -> (i32, i32) {
    %c0_i32 = arith.constant 0 : i32
    %c0_i32_0 = arith.constant 0 : i32
    %c0_i32_1 = arith.constant 0 : i32
    return %c0_i32, %c0_i32_0 : i32, i32
  }
  func.func @transform_2(%arg0: i32, %arg1: i32) -> (i32, i32) {
    %c0_i32 = arith.constant 0 : i32
    %c0_i32_0 = arith.constant 0 : i32
    %c0_i32_1 = arith.constant 0 : i32
    return %c0_i32, %c0_i32_0 : i32, i32
  }
  func.func @transform_3(%arg0: i32, %arg1: i32) -> (i32, i32, i32) {
    %c0_i32 = arith.constant 0 : i32
    %c0_i32_0 = arith.constant 0 : i32
    return %arg0, %c0_i32, %arg1 : i32, i32, i32
  }
}

</mosaic_0001>

<bundles_post_ra>
// kernel: tpu_custom_call.1
= control target key start
LH: loop header
LB: loop body
LE: loop exit
PB: predicated region body
PF: predicated region fallthrough
CT: control target
= control target key end

     0   :  { %8 = vsyncpa [#allocation3], 0  ;;  %s697_s0 = inlined_call_operand.vmem [shape: f32[2,36,64], index: 0, kind: input, shape index: {}]   ;;  %s698_s1 = inlined_call_operand.vmem [shape: f32[4,36], index: 1, kind: input, shape index: {}]   ;;  %s699_s2 = inlined_call_operand.vmem [shape: f32[4,1], index: 2, kind: input, shape index: {}]   ;;  %s700_s3 = inlined_call_operand.hbm [shape: f32[2,4,64], index: 3, kind: output, shape index: {}]  }
   0x1   :  { %10 = vsyncpa [#allocation3 + $0x1], 0  ;;  %s579_s12 = smov 0   ;;  %s581_s13 = smov 0  }
   0x2   :  { %s583_s14 = smov 0   ;;  %s585_s15 = smov 0  }
   0x3   :  { %s587_s16 = smov 0   ;;  %s589_s17 = smov 0  }
   0x4 LB: > { %s375_s18 = sadd.s32 4294967295, %s552_s17   ;;  %s376_s19 = sadd.s32 4294967294, %s552_s17   ;;  %s552_s17 = sphi %s589_s17, %s16_s17   ;;  %s548_s16 = sphi %s587_s16, %s707_s16   ;;  %s544_s15 = sphi %s585_s15, %s706_s15   ;;  %s540_s14 = sphi %s583_s14, %s705_s14   ;;  %s536_s13 = sphi %s581_s13, %s704_s13   ;;  %s532_s12 = sphi %s579_s12, %s703_s12  }
   0x5   : > { %s28_s20 = sadd.s32 1, %s548_s16  ;;  %s107_s21 = sadd.s32 1, %s540_s14 }
   0x6   : > { %p30_p0 = scmp.ge.s32.totalorder %s28_s20, 2  ;;  %p117_p1 = scmp.ne.s32.totalorder %s540_s14, %s536_s13 }
   0x7   : > { %p118_p2 = scmp.eq.s32.totalorder %s375_s18, 1  ;;  %p123_p3 = scmp.ne.s32.totalorder %s536_s13, %s532_s12 }
   0x8   : > { %s709_s20 = smov (%p30_p0, %s28_s20), 0  ;;  %p124_p5 = scmp.eq.s32.totalorder %s376_s19, 1 }
   0x9   : > { %p619_p4 = por %p118_p2, %p117_p1  ;;  %s102_s23 = ssub.s32 %s548_s16, %s709_s20 }
   0xa   : > { %p379_p6 = scmp.ge.s32.totalorder %s552_s17, 1  ;;  %p105_p7 = scmp.eq.s32.totalorder %s102_s23, 0 }
   0xb   : > { %p626_p8 = por %p124_p5, %p123_p3  ;;  %p159_p9 = scmp.lt.s32.totalorder %s552_s17, 3 }
   0xc   : > { %s632_s25 = scalar_select %p105_p7, %s540_s14, %s107_s21  }
   0xd   : > { %p160_p10 = pnand %p379_p6, %p159_p9 }
   0xe   : > { %p186_p11 = scmp.lt.s32.totalorder (!%p160_p10), %s544_s15, 1  ;;  %v554_v0 = vmov (!%p160_p10), 0.0|0.0   ;;  %vm555_vm0 = vmmov (!%p160_p10), 0   ;;  %v556_v1 = vmov (!%p160_p10), 0.0   ;;  %v200_v2 = vld [vmem:[%s699_s2] sm:$0xf] (!%p160_p10) }
   0xf   : > { %163 = sbr.rel (%p160_p10) target bundleno = 267 (0x10b), region = 32  ;;  %407 = vmatprep.subr.bf16.mxu0 (!%p160_p10), %v554_v0  ;;  %404 = vmatprep.mubr.msk.f32.mxu0 (!%p160_p10), %vm555_vm0, %v556_v1  ;;  %v557_v3 = vmov (!%p160_p10), 0   ;;  %vm210_vm1 = vcmask (!%p160_p10), 1043456   ;;  %v194_v11 = vld [vmem:[%s698_s1] sm:$0xf] (!%p160_p10)  ;;  %vm206_vm2 = vcmask (!%p160_p10), 293888  }
  0x10   : > { %473 = vset.pattern.permute.xlu0 (!%p160_p10), %v557_v3  ;;  %s183_s8 = sand.u32 (!%p160_p10), 1, %s536_s13   ;;  %s385_s10 = sshll.u32 (!%p160_p10), %s544_s15, 6  ;;  %vm284_vm3 = vcmask (!%p160_p10), 519168  }
  0x11   : > { %203 = vperm.xlu0 (!%p160_p10), %473, %v200_v2   ;;  %s380_s9 = sshll.u32 (!%p160_p10), %s183_s8, 2  ;;  %s650_s23 = scalar_lea.hbm (!%p160_p10), %s700_s3, %s385_s10 }
  0x12   : > { %s185_s11 = scalar_lea.vmem (!%p160_p10), [#allocation2], %s380_s9  ;;  %s287_s26 = scalar_lea.sflag (!%p160_p10), [#allocation3], %s183_s8 }
  0x13   : > { %s301_s18 = sshll.u32 (!%p160_p10), %s185_s11, 4  ;;  %s652_s18 = int_to_ptr.vmem [resolvable:$true] %s301_s18 }
  0x14   : > { %s474_s27 = scalar_lea.vmem (!%p160_p10), %s652_s18, 64 }
  0x15   : > { %p475_p12 = scmp.ne.s32.totalorder (!%p160_p10), %s652_s18, %s474_s27 }
  0x16   : > { %s187_s28 = scalar_select %p186_p11, %s544_s15, 1 }
  0x17   : > { %p476_p13 = pnand %p475_p12, %p619_p4  ;;  %s558_s15 = smov [#allocation2]  }
  0x18   : > { %s413_s29 = smul.u32 40, %s187_s28  ;;  %s478_s28 = sshll.u32 %s558_s15, 4  ;;  %s479_s28 = int_to_ptr.vmem [resolvable:$false] %s478_s28 }
  0x19   : > { %p477_p0 = pneg %p476_p13  ;;  %p481_p1 = scmp.lt.s32.totalorder %s652_s18, %s479_s28 }
  0x1a   : > { %s193_s5 = scalar_lea.vmem %s697_s0, %s413_s29  ;;  %s480_s29 = scalar_lea.vmem %s479_s28, 128 }
  0x1b   : > { %v195_v4 = vld [vmem:[%s193_s5] sm:$0xff]  ;;  %v196_v5 = vld [vmem:[%s193_s5 + $0x8] sm:$0xff]  ;;  %v197_v6 = vld [vmem:[%s193_s5 + $0x10] sm:$0xff]  ;;  %p482_p2 = scmp.lt.s32.totalorder %s480_s29, %s474_s27 }
  0x1c   : > { %v408_v7 = vpack.c.bf16 %v196_v5, %v195_v4  ;;  %v198_v8 = vld [vmem:[%s193_s5 + $0x18] sm:$0xff]  ;;  %v199_v10 = vld [vmem:[%s193_s5 + $0x20] sm:$0xf] }
  0x1d   : > { %v411_v9 = vpack.c.bf16 %v198_v8, %v197_v6  ;;  %p483_p3 = por %p482_p2, %p481_p1 }
  0x1e   : > { %409 = vmatpush3.bf16.msra.mxu0 %v408_v7 }
  0x1f   : > { %410 = vmatprep.subr.bf16.mxu0 %v554_v0  ;;  %p484_p5 = pnand %p483_p3, %p477_p0 }
  0x22   : > { %412 = vmatpush3.bf16.msra.mxu0 %v411_v9 }
  0x23   : > { %402 = vmatprep.subr.mxu0 %v556_v1 }
  0x26   : > { %403 = vmatpush3.msk.msra.mxu0 %vm210_vm1, %v199_v10 }
  0x27   : > { %405 = vmatmul.mubr.msk.f32.vlgmr.msra.gmra.mrb[0].mxu0 %vm206_vm2, %v194_v11 }
  0x90   : > { %v204_v12 = vpop.permute.xlu0 %203 }
  0xfa   : > { %v280_v13 = vpop.f32.mrb[0].mxu0 }
  0xfb   : > { %v281_v14 = vadd.f32 %v280_v13, %v204_v12  ;;  %v406_v15 = vpop.f32.mrb[1].mxu0 }
  0xfd   : > { %285 = vst.msk [vmem:[%s185_s11] sm:$0xf] %vm284_vm3, %v281_v14 }
  0xfe   : > { %487 = shalt.err (!%p484_p5)
}
  0xff   : > { %s488_s30 = scalar_lea.hbm %s650_s23, 64  ;;  %s492_s6 = scalar_lea.hbm %s700_s3, 128 }
 0x100   : > { %p489_p6 = scmp.ne.s32.totalorder %s650_s23, %s488_s30  ;;  %p493_p10 = scmp.lt.u32.totalorder %s650_s23, %s700_s3 }
 0x101   : > { %p494_p11 = scmp.lt.u32.totalorder %s492_s6, %s488_s30  ;;  %p496_p13 = scmp.lt.u32.totalorder %s488_s30, %s650_s23 }
 0x102   : > { %p490_p7 = pnand %p489_p6, %p619_p4 }
 0x103   : > { %p495_p12 = por %p494_p11, %p493_p10 }
 0x104   : > { %p491_p9 = pneg %p490_p7 }
 0x105   : > { %p497_p0 = por %p496_p13, %p495_p12 }
 0x107   : > { %p498_p1 = pnand %p497_p0, %p491_p9 }
 0x109   : > { %501 = shalt.err (!%p498_p1)
}
 0x10a   : > { %414 = dma.vmem_to_hbm [thread:$0]  (%p619_p4), %s652_s18, 64, %s650_s23, %s287_s26  }
 0x10b PF: > { %p420_p2 = scmp.ge.s32.totalorder %s552_s17, 2  ;;  %s313_s9 = sand.u32 1, %s532_s12  }
 0x10c   : > { %s314_s10 = scalar_lea.sflag [#allocation3], %s313_s9 }
 0x10d   : > { %p417_p3 = pnand %p420_p2, %p626_p8 }
 0x10f   : > { %527 = dma.done.wait (!%p417_p3), %s314_s10, 64  }
 0x110   : > { %529 = vsyncadd (!%p417_p3), %s314_s10, 4294967232  ;;  %s16_s17 = sadd.s32 1, %s552_s17   ;;  %s703_s12 = smov %s536_s13 }
 0x111   : > { %p13_p5 = scmp.ge.s32.totalorder %s16_s17, 4   ;;  %s704_s13 = smov %s540_s14 }
 0x112   : > { %s705_s14 = smov %s632_s25  ;;  %s706_s15 = smov %s548_s16 }
 0x113   : > { %s707_s16 = smov %s709_s20  ;;  %15 = sbr.rel (!%p13_p5) target bundleno = 4 (0x4), region = 67 }
 0x11a   :  { %319 = vsyncpa [#allocation3], 1 }
 0x11b   :  { %321 = vsyncpa [#allocation3 + $0x1], 1 }

</bundles_post_ra>
